<compile_context>
chip_gen: v7x
topology: tpu7x:2x2x1
jax: 0.10.0
libtpu: 0.0.40
codegen_flags: <defaults>
</compile_context>

<pallas_src>
import numpy as np
import jax
import jax.numpy as jnp
from jax.experimental import pallas as pl
from jax.experimental.pallas import tpu as pltpu


# ----------------------------------------------------------------------------
# Host-side parameter preprocessing (done once per set of quantum weights).
# ----------------------------------------------------------------------------
def _rot_matrix(phi, theta, omega):
    # PennyLane Rot = RZ(omega) @ RY(theta) @ RZ(phi)
    c, s = np.cos(theta / 2.0), np.sin(theta / 2.0)
    return np.array(
        [[np.exp(-1j * (phi + omega) / 2.0) * c, -np.exp(1j * (phi - omega) / 2.0) * s],
         [np.exp(-1j * (phi - omega) / 2.0) * s,  np.exp(1j * (phi + omega) / 2.0) * c]],
        dtype=np.complex128)


def _cnot_matrix(n, ctrl, tgt):
    D = 2 ** n
    M = np.zeros((D, D), dtype=np.complex128)
    for s in range(D):
        cbit = (s >> (n - 1 - ctrl)) & 1
        sp = s ^ (1 << (n - 1 - tgt)) if cbit else s
        M[sp, s] = 1.0
    return M


def _strongly_entangling_unitary(weights, n):
    """weights: (L, n, 3). Matches qml.StronglyEntanglingLayers default ranges."""
    L = weights.shape[0]
    D = 2 ** n
    U = np.eye(D, dtype=np.complex128)
    for l in range(L):
        layer = np.array([[1.0]], dtype=np.complex128)
        for i in range(n):
            layer = np.kron(layer, _rot_matrix(*weights[l, i]))
        U = layer @ U
        if n > 1:
            r = (l % (n - 1)) + 1
            for i in range(n):
                U = _cnot_matrix(n, i, (i + r) % n) @ U
    return U


def _build_quantum_constants(weights_np, n_qubits, n_layers):
    """Returns bits (n,D) f32, vcat (D, 2*Dpad) f32, zt (Dpad, n) f32."""
    D = 2 ** n_qubits
    Dpad = max(128, ((D + 127) // 128) * 128)   # lane-pad each complex half

    # Spec qnode: SEL(weights) applied n_layers times -> matrix power of the SEL block.
    u_sel = _strongly_entangling_unitary(weights_np, n_qubits)
    u_total = np.linalg.matrix_power(u_sel, n_layers)

    # Fold the embedding phase (-i)^popcount(s) into U^T: V[s,t] = phase[s] * U[t,s].
    pops = np.array([bin(s).count("1") for s in range(D)])
    phase = (-1j) ** pops
    V = phase[:, None] * u_total.T

    vcat = np.zeros((D, 2 * Dpad), np.float32)
    vcat[:, :D] = np.real(V)
    vcat[:, Dpad:Dpad + D] = np.imag(V)

    bits = np.zeros((n_qubits, D), np.float32)
    for i in range(n_qubits):
        for s in range(D):
            bits[i, s] = (s >> (n_qubits - 1 - i)) & 1

    zt = np.zeros((Dpad, n_qubits), np.float32)   # padded rows see probs == 0 exactly
    zt[:D, :] = (1.0 - 2.0 * bits).T
    return bits, vcat, zt


# ----------------------------------------------------------------------------
# Fused Pallas kernel: pre_net -> embedding -> unitary -> <Z> -> post_net -> logsoftmax
# ----------------------------------------------------------------------------
def dressed_qnet_kernel(x_ref, pre_wt_ref, pre_b_ref, bits_ref, vcat_ref,
                        zt_ref, post_wt_ref, post_b_ref, out_ref):
    # pre_net: theta = tanh(x @ W^T + b) * pi/2
    pre = jnp.dot(x_ref[...], pre_wt_ref[...], preferred_element_type=jnp.float32)
    theta = jnp.tanh(pre + pre_b_ref[...]) * (jnp.pi * 0.5)        # (TB, n)

    half = theta * 0.5
    c = jnp.cos(half)                                              # (TB, n)
    s = jnp.sin(half)
    d = s - c

    bits = bits_ref[...]                                           # (n, D) in {0,1}
    n = bits.shape[0]

    # Real embedding magnitude: mag[b,s] = prod_i (bit_i(s) ? sin_i : cos_i)
    # (initialized from qubit 0 -> no ones/zeros pass; n is tiny and static -> unrolled)
    mag = c[:, 0][:, None] + d[:, 0][:, None] * bits[0, :][None, :]
    for i in range(1, n):
        mag = mag * (c[:, i][:, None] + d[:, i][:, None] * bits[i, :][None, :])

    # Fixed circuit unitary with folded phase: ONE fused real MXU matmul.
    psi = jnp.dot(mag, vcat_ref[...], preferred_element_type=jnp.float32)  # (TB, 2*Dpad)
    dpad = vcat_ref.shape[1] // 2
    p_re = psi[:, :dpad]
    p_im = psi[:, dpad:]
    probs = p_re * p_re + p_im * p_im                              # zero beyond D

    # <Z_i> = probs @ zsign, then relu
    ez = jnp.dot(probs, zt_ref[...], preferred_element_type=jnp.float32)   # (TB, n)
    h = jnp.maximum(ez, 0.0)

    # post_net + log_softmax
    logits = jnp.dot(h, post_wt_ref[...], preferred_element_type=jnp.float32) + post_b_ref[...]
    m = jnp.max(logits, axis=-1, keepdims=True)
    z = logits - m
    lse = jnp.log(jnp.sum(jnp.exp(z), axis=-1, keepdims=True))
    # Output last dim is n_op (=2): masked store, negligible at this size (see review).
    out_ref[...] = z - lse


def dressed_quantum_net_forward(x, pre_w, pre_b, q_weights, post_w, post_b,
                                *, n_layers, tile_b=8):
    """x: (B, F). pre_w: (n_qubits, F), pre_b: (n_qubits,),
    q_weights: (n_layers, n_qubits, 3), post_w: (n_op, n_qubits), post_b: (n_op,)."""
    B, F = x.shape
    n_qubits = int(pre_w.shape[0])
    n_op = int(post_w.shape[0])
    D = 2 ** n_qubits

    bits, vcat, zt = _build_quantum_constants(
        np.asarray(q_weights, np.float64), n_qubits, n_layers)
    dpad2 = vcat.shape[1]

    pre_wt = jnp.asarray(np.asarray(pre_w).T, jnp.float32)         # (F, n_qubits)
    pre_b2 = jnp.asarray(np.asarray(pre_b).reshape(1, n_qubits), jnp.float32)
    post_wt = jnp.asarray(np.asarray(post_w).T, jnp.float32)       # (n_qubits, n_op)
    post_b2 = jnp.asarray(np.asarray(post_b).reshape(1, n_op), jnp.float32)

    # Pad batch to a multiple of the batch tile, slice back after the call.
    Bp = ((B + tile_b - 1) // tile_b) * tile_b
    xp = x.astype(jnp.float32)
    if Bp != B:
        xp = jnp.pad(xp, ((0, Bp - B), (0, 0)))

    const = lambda i: (0, 0)
    # NOTE: vcat is 2*4^n_qubits * 4 bytes; for n_qubits >= ~11 add a K-tiled
    # reduction grid axis + bf16 storage (see review) -- irrelevant at n_qubits=5.
    out = pl.pallas_call(
        dressed_qnet_kernel,
        out_shape=jax.ShapeDtypeStruct((Bp, n_op), jnp.float32),
        grid=(Bp // tile_b,),
        in_specs=[
            pl.BlockSpec((tile_b, F), lambda i: (i, 0)),           # x batch tile
            pl.BlockSpec((F, n_qubits), const),                    # pre_net W^T
            pl.BlockSpec((1, n_qubits), const),                    # pre_net b
            pl.BlockSpec((n_qubits, D), const),                    # per-qubit bit masks
            pl.BlockSpec((D, dpad2), const),                       # [Re(V)|Im(V)], lane padded
            pl.BlockSpec((dpad2 // 2, n_qubits), const),           # Z signs (padded rows 0)
            pl.BlockSpec((n_qubits, n_op), const),                 # post_net W^T
            pl.BlockSpec((1, n_op), const),                        # post_net b
        ],
        out_specs=pl.BlockSpec((tile_b, n_op), lambda i: (i, 0)),
        compiler_params=pltpu.CompilerParams(
            dimension_semantics=("parallel",)),                    # shard batch over TCs
    )(xp, pre_wt, pre_b2, jnp.asarray(bits), jnp.asarray(vcat), jnp.asarray(zt),
      post_wt, post_b2)
    return out[:B]


# ----------------------------------------------------------------------------
# Pure-numpy reference (straight state-vector simulation, no phase folding).
# ----------------------------------------------------------------------------
def _reference_forward(x_np, pre_w, pre_b, weights, post_w, post_b, n_qubits, n_layers):
    theta = np.tanh(x_np @ pre_w.T + pre_b) * (np.pi / 2.0)
    D = 2 ** n_qubits
    U = np.linalg.matrix_power(_strongly_entangling_unitary(weights, n_qubits), n_layers)
    B = x_np.shape[0]
    exps = np.zeros((B, n_qubits))
    for b in range(B):
        psi = np.array([1.0 + 0.0j])
        for i in range(n_qubits):
            t = theta[b, i]
            psi = np.kron(psi, np.array([np.cos(t / 2.0), -1j * np.sin(t / 2.0)]))
        psi = U @ psi
        probs = np.abs(psi) ** 2
        for i in range(n_qubits):
            bit = np.array([(s >> (n_qubits - 1 - i)) & 1 for s in range(D)])
            exps[b, i] = np.sum(probs * (1.0 - 2.0 * bit))
    h = np.maximum(exps, 0.0)
    logits = h @ post_w.T + post_b
    m = logits.max(axis=1, keepdims=True)
    z = logits - m
    return z - np.log(np.exp(z).sum(axis=1, keepdims=True))


if __name__ == "__main__":
    input_shape = 32   # F (small stand-in for the usual 512)
    n_qubits = 5       # module default
    n_layers = 3       # module default
    n_op = 2           # module default
    batch = 16

    key = jax.random.PRNGKey(0)
    k1, k2, k3, k4, k5, k6 = jax.random.split(key, 6)
    x = jax.random.normal(k1, (batch, input_shape), jnp.float32)
    pre_w = np.asarray(jax.random.normal(k2, (n_qubits, input_shape)),
                       np.float64) / np.sqrt(input_shape)
    pre_b = np.asarray(jax.random.normal(k3, (n_qubits,)), np.float64) * 0.1
    # TorchLayer default init: uniform(0, 2*pi) over (n_layers, n_qubits, 3)
    q_w = np.asarray(jax.random.uniform(k4, (n_layers, n_qubits, 3), jnp.float32,
                                        minval=0.0, maxval=2.0 * np.pi), np.float64)
    post_w = np.asarray(jax.random.normal(k5, (n_op, n_qubits)),
                        np.float64) / np.sqrt(n_qubits)
    post_b = np.asarray(jax.random.normal(k6, (n_op,)), np.float64) * 0.1

    out = dressed_quantum_net_forward(x, pre_w, pre_b, q_w, post_w, post_b,
                                      n_layers=n_layers, tile_b=8)
    out = jax.block_until_ready(out)
    assert out.shape == (batch, n_op)

    ref = _reference_forward(np.asarray(x, np.float64), pre_w, pre_b, q_w,
                             post_w, post_b, n_qubits, n_layers)
    err = np.max(np.abs(np.asarray(out, np.float64) - ref))
    assert err < 5e-3, f"max abs error vs reference: {err}"
    print("KERNEL_OK")
</pallas_src>

<mosaic_0001>
module attributes {stable_mosaic.version = 11 : i64} {
  func.func @dressed_qnet_kernel(%arg0: i32, %arg1: memref<8x32xf32, #tpu.memory_space<vmem>>, %arg2: memref<32x5xf32, #tpu.memory_space<vmem>>, %arg3: memref<1x5xf32, #tpu.memory_space<vmem>>, %arg4: memref<5x32xf32, #tpu.memory_space<vmem>>, %arg5: memref<32x256xf32, #tpu.memory_space<vmem>>, %arg6: memref<128x5xf32, #tpu.memory_space<vmem>>, %arg7: memref<5x2xf32, #tpu.memory_space<vmem>>, %arg8: memref<1x2xf32, #tpu.memory_space<vmem>>, %arg9: memref<8x2xf32, #tpu.memory_space<vmem>>) attributes {dimension_semantics = [#tpu.dimension_semantics<parallel>], iteration_bounds = array<i64: 2>, scalar_prefetch = 0 : i64, scratch_operands = 0 : i64, tpu.core_type = #tpu.core_type<tc>, window_params = [{transform_indices = @transform_0, window_bounds = array<i64: 8, 32>}, {pipeline_mode = #tpu.pipeline_mode<synchronous>, transform_indices = @transform_1, window_bounds = array<i64: 32, 5>}, {pipeline_mode = #tpu.pipeline_mode<synchronous>, transform_indices = @transform_2, window_bounds = array<i64: 1, 5>}, {pipeline_mode = #tpu.pipeline_mode<synchronous>, transform_indices = @transform_3, window_bounds = array<i64: 5, 32>}, {pipeline_mode = #tpu.pipeline_mode<synchronous>, transform_indices = @transform_4, window_bounds = array<i64: 32, 256>}, {pipeline_mode = #tpu.pipeline_mode<synchronous>, transform_indices = @transform_5, window_bounds = array<i64: 128, 5>}, {pipeline_mode = #tpu.pipeline_mode<synchronous>, transform_indices = @transform_6, window_bounds = array<i64: 5, 2>}, {pipeline_mode = #tpu.pipeline_mode<synchronous>, transform_indices = @transform_7, window_bounds = array<i64: 1, 2>}, {transform_indices = @transform_8, window_bounds = array<i64: 8, 2>}]} {
    %c0 = arith.constant 0 : index
    %c0_0 = arith.constant 0 : index
    %0 = vector.load %arg1[%c0, %c0_0] : memref<8x32xf32, #tpu.memory_space<vmem>>, vector<8x32xf32>
    %c0_1 = arith.constant 0 : index
    %c0_2 = arith.constant 0 : index
    %1 = vector.load %arg2[%c0_1, %c0_2] : memref<32x5xf32, #tpu.memory_space<vmem>>, vector<32x5xf32>
    %cst = arith.constant dense<0.000000e+00> : vector<8x5xf32>
    %2 = tpu.matmul %0, %1, %cst {dimension_numbers = #tpu.dot_dimension_numbers<[1], [0], [0], [1], [0, 0, 1, 1], [], []>} : vector<8x32xf32>, vector<32x5xf32>, vector<8x5xf32> -> vector<8x5xf32>
    %c0_3 = arith.constant 0 : index
    %c0_4 = arith.constant 0 : index
    %3 = vector.load %arg3[%c0_3, %c0_4] : memref<1x5xf32, #tpu.memory_space<vmem>>, vector<1x5xf32>
    %4 = vector.broadcast %3 : vector<1x5xf32> to vector<8x5xf32>
    %5 = arith.addf %2, %4 : vector<8x5xf32>
    %6 = math.tanh %5 : vector<8x5xf32>
    %cst_5 = arith.constant 1.57079637 : f32
    %7 = vector.broadcast %cst_5 : f32 to vector<8x5xf32>
    %8 = arith.mulf %6, %7 : vector<8x5xf32>
    %cst_6 = arith.constant 5.000000e-01 : f32
    %9 = vector.broadcast %cst_6 : f32 to vector<8x5xf32>
    %10 = arith.mulf %8, %9 : vector<8x5xf32>
    %11 = math.cos %10 : vector<8x5xf32>
    %12 = math.sin %10 : vector<8x5xf32>
    %13 = arith.subf %12, %11 : vector<8x5xf32>
    %c0_7 = arith.constant 0 : index
    %c0_8 = arith.constant 0 : index
    %14 = vector.load %arg4[%c0_7, %c0_8] : memref<5x32xf32, #tpu.memory_space<vmem>>, vector<5x32xf32>
    %15 = vector.extract_strided_slice %11 {offsets = [0, 0], sizes = [8, 1], strides = [1, 1]} : vector<8x5xf32> to vector<8x1xf32>
    %16 = vector.shape_cast %15 : vector<8x1xf32> to vector<8xf32>
    %17 = vector.shape_cast %16 : vector<8xf32> to vector<8x1xf32>
    %18 = vector.extract_strided_slice %13 {offsets = [0, 0], sizes = [8, 1], strides = [1, 1]} : vector<8x5xf32> to vector<8x1xf32>
    %19 = vector.shape_cast %18 : vector<8x1xf32> to vector<8xf32>
    %20 = vector.shape_cast %19 : vector<8xf32> to vector<8x1xf32>
    %21 = vector.extract_strided_slice %14 {offsets = [0, 0], sizes = [1, 32], strides = [1, 1]} : vector<5x32xf32> to vector<1x32xf32>
    %22 = vector.shape_cast %21 : vector<1x32xf32> to vector<32xf32>
    %23 = vector.shape_cast %22 : vector<32xf32> to vector<1x32xf32>
    %24 = vector.broadcast %20 : vector<8x1xf32> to vector<8x32xf32>
    %25 = vector.broadcast %23 : vector<1x32xf32> to vector<8x32xf32>
    %26 = arith.mulf %24, %25 : vector<8x32xf32>
    %27 = vector.broadcast %17 : vector<8x1xf32> to vector<8x32xf32>
    %28 = arith.addf %27, %26 : vector<8x32xf32>
    %29 = vector.extract_strided_slice %11 {offsets = [0, 1], sizes = [8, 1], strides = [1, 1]} : vector<8x5xf32> to vector<8x1xf32>
    %30 = vector.shape_cast %29 : vector<8x1xf32> to vector<8xf32>
    %31 = vector.shape_cast %30 : vector<8xf32> to vector<8x1xf32>
    %32 = vector.extract_strided_slice %13 {offsets = [0, 1], sizes = [8, 1], strides = [1, 1]} : vector<8x5xf32> to vector<8x1xf32>
    %33 = vector.shape_cast %32 : vector<8x1xf32> to vector<8xf32>
    %34 = vector.shape_cast %33 : vector<8xf32> to vector<8x1xf32>
    %35 = vector.extract_strided_slice %14 {offsets = [1, 0], sizes = [1, 32], strides = [1, 1]} : vector<5x32xf32> to vector<1x32xf32>
    %36 = vector.shape_cast %35 : vector<1x32xf32> to vector<32xf32>
    %37 = vector.shape_cast %36 : vector<32xf32> to vector<1x32xf32>
    %38 = vector.broadcast %34 : vector<8x1xf32> to vector<8x32xf32>
    %39 = vector.broadcast %37 : vector<1x32xf32> to vector<8x32xf32>
    %40 = arith.mulf %38, %39 : vector<8x32xf32>
    %41 = vector.broadcast %31 : vector<8x1xf32> to vector<8x32xf32>
    %42 = arith.addf %41, %40 : vector<8x32xf32>
    %43 = arith.mulf %28, %42 : vector<8x32xf32>
    %44 = vector.extract_strided_slice %11 {offsets = [0, 2], sizes = [8, 1], strides = [1, 1]} : vector<8x5xf32> to vector<8x1xf32>
    %45 = vector.shape_cast %44 : vector<8x1xf32> to vector<8xf32>
    %46 = vector.shape_cast %45 : vector<8xf32> to vector<8x1xf32>
    %47 = vector.extract_strided_slice %13 {offsets = [0, 2], sizes = [8, 1], strides = [1, 1]} : vector<8x5xf32> to vector<8x1xf32>
    %48 = vector.shape_cast %47 : vector<8x1xf32> to vector<8xf32>
    %49 = vector.shape_cast %48 : vector<8xf32> to vector<8x1xf32>
    %50 = vector.extract_strided_slice %14 {offsets = [2, 0], sizes = [1, 32], strides = [1, 1]} : vector<5x32xf32> to vector<1x32xf32>
    %51 = vector.shape_cast %50 : vector<1x32xf32> to vector<32xf32>
    %52 = vector.shape_cast %51 : vector<32xf32> to vector<1x32xf32>
    %53 = vector.broadcast %49 : vector<8x1xf32> to vector<8x32xf32>
    %54 = vector.broadcast %52 : vector<1x32xf32> to vector<8x32xf32>
    %55 = arith.mulf %53, %54 : vector<8x32xf32>
    %56 = vector.broadcast %46 : vector<8x1xf32> to vector<8x32xf32>
    %57 = arith.addf %56, %55 : vector<8x32xf32>
    %58 = arith.mulf %43, %57 : vector<8x32xf32>
    %59 = vector.extract_strided_slice %11 {offsets = [0, 3], sizes = [8, 1], strides = [1, 1]} : vector<8x5xf32> to vector<8x1xf32>
    %60 = vector.shape_cast %59 : vector<8x1xf32> to vector<8xf32>
    %61 = vector.shape_cast %60 : vector<8xf32> to vector<8x1xf32>
    %62 = vector.extract_strided_slice %13 {offsets = [0, 3], sizes = [8, 1], strides = [1, 1]} : vector<8x5xf32> to vector<8x1xf32>
    %63 = vector.shape_cast %62 : vector<8x1xf32> to vector<8xf32>
    %64 = vector.shape_cast %63 : vector<8xf32> to vector<8x1xf32>
    %65 = vector.extract_strided_slice %14 {offsets = [3, 0], sizes = [1, 32], strides = [1, 1]} : vector<5x32xf32> to vector<1x32xf32>
    %66 = vector.shape_cast %65 : vector<1x32xf32> to vector<32xf32>
    %67 = vector.shape_cast %66 : vector<32xf32> to vector<1x32xf32>
    %68 = vector.broadcast %64 : vector<8x1xf32> to vector<8x32xf32>
    %69 = vector.broadcast %67 : vector<1x32xf32> to vector<8x32xf32>
    %70 = arith.mulf %68, %69 : vector<8x32xf32>
    %71 = vector.broadcast %61 : vector<8x1xf32> to vector<8x32xf32>
    %72 = arith.addf %71, %70 : vector<8x32xf32>
    %73 = arith.mulf %58, %72 : vector<8x32xf32>
    %74 = vector.extract_strided_slice %11 {offsets = [0, 4], sizes = [8, 1], strides = [1, 1]} : vector<8x5xf32> to vector<8x1xf32>
    %75 = vector.shape_cast %74 : vector<8x1xf32> to vector<8xf32>
    %76 = vector.shape_cast %75 : vector<8xf32> to vector<8x1xf32>
    %77 = vector.extract_strided_slice %13 {offsets = [0, 4], sizes = [8, 1], strides = [1, 1]} : vector<8x5xf32> to vector<8x1xf32>
    %78 = vector.shape_cast %77 : vector<8x1xf32> to vector<8xf32>
    %79 = vector.shape_cast %78 : vector<8xf32> to vector<8x1xf32>
    %80 = vector.extract_strided_slice %14 {offsets = [4, 0], sizes = [1, 32], strides = [1, 1]} : vector<5x32xf32> to vector<1x32xf32>
    %81 = vector.shape_cast %80 : vector<1x32xf32> to vector<32xf32>
    %82 = vector.shape_cast %81 : vector<32xf32> to vector<1x32xf32>
    %83 = vector.broadcast %79 : vector<8x1xf32> to vector<8x32xf32>
    %84 = vector.broadcast %82 : vector<1x32xf32> to vector<8x32xf32>
    %85 = arith.mulf %83, %84 : vector<8x32xf32>
    %86 = vector.broadcast %76 : vector<8x1xf32> to vector<8x32xf32>
    %87 = arith.addf %86, %85 : vector<8x32xf32>
    %88 = arith.mulf %73, %87 : vector<8x32xf32>
    %c0_9 = arith.constant 0 : index
    %c0_10 = arith.constant 0 : index
    %89 = vector.load %arg5[%c0_9, %c0_10] : memref<32x256xf32, #tpu.memory_space<vmem>>, vector<32x256xf32>
    %cst_11 = arith.constant dense<0.000000e+00> : vector<8x256xf32>
    %90 = tpu.matmul %88, %89, %cst_11 {dimension_numbers = #tpu.dot_dimension_numbers<[1], [0], [0], [1], [0, 0, 1, 1], [], []>} : vector<8x32xf32>, vector<32x256xf32>, vector<8x256xf32> -> vector<8x256xf32>
    %91 = vector.extract_strided_slice %90 {offsets = [0, 0], sizes = [8, 128], strides = [1, 1]} : vector<8x256xf32> to vector<8x128xf32>
    %92 = vector.extract_strided_slice %90 {offsets = [0, 128], sizes = [8, 128], strides = [1, 1]} : vector<8x256xf32> to vector<8x128xf32>
    %93 = arith.mulf %91, %91 : vector<8x128xf32>
    %94 = arith.mulf %92, %92 : vector<8x128xf32>
    %95 = arith.addf %93, %94 : vector<8x128xf32>
    %c0_12 = arith.constant 0 : index
    %c0_13 = arith.constant 0 : index
    %96 = vector.load %arg6[%c0_12, %c0_13] : memref<128x5xf32, #tpu.memory_space<vmem>>, vector<128x5xf32>
    %cst_14 = arith.constant dense<0.000000e+00> : vector<8x5xf32>
    %97 = tpu.matmul %95, %96, %cst_14 {dimension_numbers = #tpu.dot_dimension_numbers<[1], [0], [0], [1], [0, 0, 1, 1], [], []>} : vector<8x128xf32>, vector<128x5xf32>, vector<8x5xf32> -> vector<8x5xf32>
    %cst_15 = arith.constant 0.000000e+00 : f32
    %98 = vector.broadcast %cst_15 : f32 to vector<8x5xf32>
    %99 = arith.maximumf %97, %98 : vector<8x5xf32>
    %c0_16 = arith.constant 0 : index
    %c0_17 = arith.constant 0 : index
    %100 = vector.load %arg7[%c0_16, %c0_17] : memref<5x2xf32, #tpu.memory_space<vmem>>, vector<5x2xf32>
    %cst_18 = arith.constant dense<0.000000e+00> : vector<8x2xf32>
    %101 = tpu.matmul %99, %100, %cst_18 {dimension_numbers = #tpu.dot_dimension_numbers<[1], [0], [0], [1], [0, 0, 1, 1], [], []>} : vector<8x5xf32>, vector<5x2xf32>, vector<8x2xf32> -> vector<8x2xf32>
    %c0_19 = arith.constant 0 : index
    %c0_20 = arith.constant 0 : index
    %102 = vector.load %arg8[%c0_19, %c0_20] : memref<1x2xf32, #tpu.memory_space<vmem>>, vector<1x2xf32>
    %103 = vector.broadcast %102 : vector<1x2xf32> to vector<8x2xf32>
    %104 = arith.addf %101, %103 : vector<8x2xf32>
    %cst_21 = arith.constant dense<0xFF800000> : vector<8xf32>
    %105 = vector.multi_reduction <maximumf>, %104, %cst_21 [1] : vector<8x2xf32> to vector<8xf32>
    %106 = vector.shape_cast %105 : vector<8xf32> to vector<8x1xf32>
    %107 = vector.broadcast %106 : vector<8x1xf32> to vector<8x2xf32>
    %108 = arith.subf %104, %107 : vector<8x2xf32>
    %109 = math.exp %108 : vector<8x2xf32>
    %cst_22 = arith.constant dense<0.000000e+00> : vector<8xf32>
    %110 = vector.multi_reduction <add>, %109, %cst_22 [1] : vector<8x2xf32> to vector<8xf32>
    %111 = vector.shape_cast %110 : vector<8xf32> to vector<8x1xf32>
    %112 = math.log %111 : vector<8x1xf32>
    %113 = vector.broadcast %112 : vector<8x1xf32> to vector<8x2xf32>
    %114 = arith.subf %108, %113 : vector<8x2xf32>
    %c0_23 = arith.constant 0 : index
    %c0_24 = arith.constant 0 : index
    %115 = vector.load %arg9[%c0_23, %c0_24] : memref<8x2xf32, #tpu.memory_space<vmem>>, vector<8x2xf32>
    tpu.vector_store %arg9[%c0_23, %c0_24], %114 {strides = array<i32>} : memref<8x2xf32, #tpu.memory_space<vmem>>, vector<8x2xf32>,
    return
  }
  func.func @transform_0(%arg0: i32) -> (i32, i32) {
    %c0_i32 = arith.constant 0 : i32
    %c0_i32_0 = arith.constant 0 : i32
    return %arg0, %c0_i32 : i32, i32
  }
  func.func @transform_1(%arg0: i32) -> (i32, i32) {
    %c0_i32 = arith.constant 0 : i32
    %c0_i32_0 = arith.constant 0 : i32
    %c0_i32_1 = arith.constant 0 : i32
    return %c0_i32, %c0_i32_0 : i32, i32
  }
  func.func @transform_2(%arg0: i32) -> (i32, i32) {
    %c0_i32 = arith.constant 0 : i32
    %c0_i32_0 = arith.constant 0 : i32
    %c0_i32_1 = arith.constant 0 : i32
    return %c0_i32, %c0_i32_0 : i32, i32
  }
  func.func @transform_3(%arg0: i32) -> (i32, i32) {
    %c0_i32 = arith.constant 0 : i32
    %c0_i32_0 = arith.constant 0 : i32
    %c0_i32_1 = arith.constant 0 : i32
    return %c0_i32, %c0_i32_0 : i32, i32
  }
  func.func @transform_4(%arg0: i32) -> (i32, i32) {
    %c0_i32 = arith.constant 0 : i32
    %c0_i32_0 = arith.constant 0 : i32
    %c0_i32_1 = arith.constant 0 : i32
    return %c0_i32, %c0_i32_0 : i32, i32
  }
  func.func @transform_5(%arg0: i32) -> (i32, i32) {
    %c0_i32 = arith.constant 0 : i32
    %c0_i32_0 = arith.constant 0 : i32
    %c0_i32_1 = arith.constant 0 : i32
    return %c0_i32, %c0_i32_0 : i32, i32
  }
  func.func @transform_6(%arg0: i32) -> (i32, i32) {
    %c0_i32 = arith.constant 0 : i32
    %c0_i32_0 = arith.constant 0 : i32
    %c0_i32_1 = arith.constant 0 : i32
    return %c0_i32, %c0_i32_0 : i32, i32
  }
  func.func @transform_7(%arg0: i32) -> (i32, i32) {
    %c0_i32 = arith.constant 0 : i32
    %c0_i32_0 = arith.constant 0 : i32
    %c0_i32_1 = arith.constant 0 : i32
    return %c0_i32, %c0_i32_0 : i32, i32
  }
  func.func @transform_8(%arg0: i32) -> (i32, i32) {
    %c0_i32 = arith.constant 0 : i32
    %c0_i32_0 = arith.constant 0 : i32
    return %arg0, %c0_i32 : i32, i32
  }
}

</mosaic_0001>

<bundles_post_ra>
// kernel: tpu_custom_call.1
= control target key start
LH: loop header
LB: loop body
LE: loop exit
PB: predicated region body
PF: predicated region fallthrough
CT: control target
= control target key end

     0   :  { %s1249_s27 = smov 0   ;;  %s1417_s0 = inlined_call_operand.vmem [shape: f32[16,32], index: 0, kind: input, shape index: {}]   ;;  %s1418_s1 = inlined_call_operand.vmem [shape: f32[32,5], index: 1, kind: input, shape index: {}]   ;;  %s1419_s2 = inlined_call_operand.vmem [shape: f32[1,5], index: 2, kind: input, shape index: {}]   ;;  %s1420_s3 = inlined_call_operand.vmem [shape: f32[5,32], index: 3, kind: input, shape index: {}]   ;;  %s1421_s4 = inlined_call_operand.vmem [shape: f32[32,256], index: 4, kind: input, shape index: {}]   ;;  %s1422_s5 = inlined_call_operand.vmem [shape: f32[128,5], index: 5, kind: input, shape index: {}]   ;;  %s1423_s6 = inlined_call_operand.vmem [shape: f32[5,2], index: 6, kind: input, shape index: {}]   ;;  %s1424_s7 = inlined_call_operand.vmem [shape: f32[1,2], index: 7, kind: input, shape index: {}]   ;;  %s1425_s8 = inlined_call_operand.vmem [shape: f32[16,2], index: 8, kind: output, shape index: {}]  }
   0x1 LB: > { %s1000_s28 = sadd.s32 4294967295, %s1188_s27   ;;  %p1004_p0 = scmp.ge.s32.totalorder %s1188_s27, 1  ;;  %s1188_s27 = sphi %s1249_s27, %s18_s27  }
   0x2   : > { %p261_p1 = scmp.lt.s32.totalorder %s1188_s27, 3 }
   0x4   : > { %p262_p2 = pnand %p1004_p0, %p261_p1 }
   0x5   : > { %v302_v0 = vld [vmem:[%s1418_s1] sm:$0xff] (!%p262_p2)  ;;  %v303_v1 = vld [vmem:[%s1418_s1 + $0x8] sm:$0xff] (!%p262_p2)  ;;  %v304_v2 = vld [vmem:[%s1418_s1 + $0x10] sm:$0xff] (!%p262_p2)  ;;  %v1190_v3 = vmov (!%p262_p2), 0.0|0.0   ;;  %vm1191_vm0 = vmmov (!%p262_p2), 0   ;;  %v1192_v6 = vmov (!%p262_p2), 0.0  }
   0x6   : > { %265 = sbr.rel (%p262_p2) target bundleno = 1444 (0x5a4), region = 52  ;;  %1098 = vmatprep.subr.bf16.mxu1 (!%p262_p2), %v1190_v3  ;;  %v1099_v4 = vpack.c.bf16 (!%p262_p2), %v303_v1, %v302_v0  ;;  %v305_v5 = vld [vmem:[%s1418_s1 + $0x18] sm:$0xff] (!%p262_p2)  ;;  %1055 = vmatprep.mubr.msk.f32.mxu1 (!%p262_p2), %vm1191_vm0, %v1192_v6  ;;  %p293_p3 = scmp.lt.s32.totalorder (!%p262_p2), %s1000_s28, 1  ;;  %vm313_vm1 = vcmask (!%p262_p2), 261120   ;;  %v1193_v9 = vmov (!%p262_p2), 2   ;;  %v1194_v10 = vmov (!%p262_p2), 0  }
   0x7   : > { %1112 = vmatprep.subr.bf16.mxu0 (!%p262_p2), %v1190_v3  ;;  %1090 = vmatprep.mubr.msk.f32.mxu0 (!%p262_p2), %vm1191_vm0, %v1192_v6  ;;  %v1102_v7 = vpack.c.bf16 (!%p262_p2), %v305_v5, %v304_v2  ;;  %v1007_v11 = vld [vmem:[%s1419_s2] ss:$0 sm:$0xff] (!%p262_p2)  ;;  %v1195_v28 = vmov (!%p262_p2), 683565275   ;;  %v1196_v30 = vmov (!%p262_p2), 2475754826  }
   0x8   : > { %1100 = vmatpush3.bf16.msra.mxu1 (!%p262_p2), %v1099_v4  ;;  %1164 = vset.pattern.permute.xlu0 (!%p262_p2), %v1193_v9  ;;  %v1197_v33 = vmov (!%p262_p2), 2131351028   ;;  %v1198_v36 = vmov (!%p262_p2), 2102212464   ;;  %v1199_v39 = vmov (!%p262_p2), 920167782  }
   0x9   : > { %1101 = vmatprep.subr.bf16.mxu1 (!%p262_p2), %v1190_v3  ;;  %1162 = vset.pattern.permute.xlu1 (!%p262_p2), %v1194_v10  ;;  %v1200_v42 = vmov (!%p262_p2), 1326507024  }
   0xc   : > { %1103 = vmatpush3.bf16.msra.mxu1 (!%p262_p2), %v1102_v7 }
   0xd   : > { %s1427_s28 = smov (!%p293_p3, %s1000_s28), 1 }
   0xe   : > { %s1005_s15 = sshll.u32 %s1427_s28, 3 }
   0xf   : > { %s296_s18 = scalar_lea.vmem %s1417_s0, %s1005_s15  ;;  %s300_s20 = scalar_lea.vmem %s1425_s8, %s1005_s15 }
  0x10   : > { %v301_v8 = vld [vmem:[%s296_s18] sm:$0xff] }
  0x11   : > { %1056 = vmatmul.mubr.msk.f32.vlgmr.msra.gmra.mrb[0].mxu1 %vm313_vm1, %v301_v8 }
  0x12   : > { %750 = vmatprep.mubr.f32.mxu1 %v1192_v6 }
  0xe4   : > { %v383_v12 = vpop.f32.mrb[0].mxu1 }
  0xe5   : > { %v384_v13 = vadd.f32 %v1007_v11, %v383_v12  ;;  %v1057_v14 = vpop.f32.mrb[1].mxu1 }
  0xe7   : > { %1172 = vtanh.f32 %v384_v13 }
  0xf1   : > { %v1173_v15 = vpop.eup %1172 }
  0xf2   : > { %v388_v16 = vmul.f32 1.5707964, %v1173_v15 }
  0xf4   : > { %v1291_v17 = vmul.f32 0.5, %v388_v16 }
  0xf6   : > { %v393_v18 = vand.u32 2139095040, %v1291_v17  ;;  %v390_v22 = vand.u32 2147483647, %v1291_v17  ;;  %vm392_vm9 = vcmp.lt.s32.totalorder %v1291_v17, 0 }
  0xf8   : > { %v394_v19 = vshrl.u32 %v393_v18, 23  ;;  %v397_v25 = vand.u32 8388607, %v390_v22  ;;  %vm391_vm10 = vcmp.le.f32.partialorder %v390_v22, 0.7853982 }
  0xfa   : > { %v1009_v20 = vadd.s32 4294967169, %v394_v19  ;;  %v398_v44 = vor.u32 8388608, %v397_v25 }
  0xfc   : > { %v400_v21 = vadd.s32 1, %v1009_v20  ;;  %v438_v58 = vshll.u32 %v398_v44, 8 }
  0xfe   : > { %vm401_vm2 = vcmp.gt.s32.totalorder %v400_v21, 0 }
  0xff   : > { %v402_v23 = vsel %vm401_vm2, %v400_v21, 0 }
 0x100   : > { %v404_v24 = vand.u32 31, %v402_v23  ;;  %v403_v27 = vshrl.u32 %v402_v23, 5 }
 0x102   : > { %v405_v26 = vsub.s32 32, %v404_v24  ;;  %v407_v29 = vshll.u32 %v1195_v28, %v404_v24  ;;  %v410_v31 = vshll.u32 %v1196_v30, %v404_v24  ;;  %v413_v35 = vshll.u32 %v1197_v33, %v404_v24 }
 0x103   : > { %v416_v38 = vshll.u32 %v1198_v36, %v404_v24  ;;  %v419_v41 = vshll.u32 %v1199_v39, %v404_v24  ;;  %vm422_vm3 = vcmp.lt.s32.totalorder %v403_v27, 1  ;;  %vm425_vm4 = vcmp.lt.s32.totalorder %v403_v27, 4 }
 0x104   : > { %v408_v32 = vshrl.u32 %v1196_v30, %v405_v26  ;;  %v411_v34 = vshrl.u32 %v1197_v33, %v405_v26  ;;  %v414_v37 = vshrl.u32 %v1198_v36, %v405_v26  ;;  %v417_v40 = vshrl.u32 %v1199_v39, %v405_v26 }
 0x105   : > { %v420_v43 = vshrl.u32 %v1200_v42, %v405_v26  ;;  %v406_v53 = vshrl.u32 %v1195_v28, %v405_v26  ;;  %vm424_vm5 = vcmp.lt.s32.totalorder %v403_v27, 3  ;;  %vm423_vm6 = vcmp.lt.s32.totalorder %v403_v27, 2 }
 0x106   : > { %v409_v45 = vor.u32 %v408_v32, %v407_v29  ;;  %v412_v46 = vor.u32 %v411_v34, %v410_v31  ;;  %v415_v47 = vor.u32 %v414_v37, %v413_v35  ;;  %v418_v48 = vor.u32 %v417_v40, %v416_v38 }
 0x107   : > { %v421_v49 = vor.u32 %v420_v43, %v419_v41 }
 0x108   : > { %v427_v50 = vsel %vm425_vm4, %v415_v47, 2102212464  ;;  %v430_v51 = vsel %vm422_vm3, %v409_v45, %v412_v46  ;;  %v434_v52 = vsel %vm422_vm3, %v412_v46, %v415_v47  ;;  %v431_v54 = vsel %vm425_vm4, %v418_v48, 920167782 }
 0x109   : > { %v435_v55 = vsel %vm425_vm4, %v421_v49, 1326507024  ;;  %v432_v56 = vsel %vm424_vm5, %v415_v47, %v431_v54  ;;  %v426_v59 = vsel %vm422_vm3, %v406_v53, %v409_v45  ;;  %v428_v60 = vsel %vm424_vm5, %v412_v46, %v427_v50 }
 0x10a   : > { %v436_v57 = vsel %vm424_vm5, %v418_v48, %v435_v55  ;;  %v433_v61 = vsel %vm423_vm6, %v430_v51, %v432_v56  ;;  %v429_v4 = vsel %vm423_vm6, %v426_v59, %v428_v60  ;;  %vm482_vm3 = vweird.f32 %v1291_v17  ;;  %v675_v60 = vld [vmem:[%s1421_s4] sm:$0xff] }
 0x10b   : > { %v437_v62 = vsel %vm423_vm6, %v434_v52, %v436_v57  ;;  %v1300_v1 = vmul.u32.u64.low %v438_v58, %v433_v61  ;;  %v1301_v2 = vmul.u32.u64.high %v438_v58, %v433_v61, %v1300_v1  ;;  %v445_v7 = vmul.u32 %v438_v58, %v429_v4 }
 0x10c   : > { %v1297_v63 = vmul.u32.u64.low %v438_v58, %v437_v62  ;;  %v1298_v0 = vmul.u32.u64.high %v438_v58, %v437_v62, %v1297_v63  ;;  %v1201_v56 = vmov 1   ;;  %v1202_v57 = vmov 3   ;;  %v678_v58 = vld [vmem:[%s1421_s4 + $0x18] sm:$0xff]  ;;  %v680_v62 = vld [vmem:[%s1421_s4 + $0x28] sm:$0xff] }
 0x10d   : > { %v448_v5 = vadd.s32 1, %v1301_v2  ;;  %v682_v63 = vld [vmem:[%s1421_s4 + $0x38] sm:$0xff]  ;;  %vm859_vm4 = vcmask 1044480  }
 0x10e   : > { %vm447_vm7 = vc.u32 %v1298_v0, %v1300_v1  ;;  %v446_v23 = vadd.s32 %v1300_v1, %v1298_v0  ;;  %v1108_v0 = vpack.c.bf16 %v682_v63, %v680_v62  ;;  %v679_v1 = vld [vmem:[%s1421_s4 + $0x20] sm:$0xff]  ;;  %v774_v63 = vld [vmem:[%s1422_s5 + $0x70] sm:$0xff] }
 0x10f   : > { %v449_v8 = vsel %vm447_vm7, %v448_v5, %v1301_v2  ;;  %v681_v2 = vld [vmem:[%s1421_s4 + $0x30] sm:$0xff]  ;;  %v760_v5 = vld [vmem:[%s1422_s5] sm:$0xff] }
 0x110   : > { %v450_v11 = vadd.s32 %v449_v8, %v445_v7  ;;  %v1110_v4 = vpack.c.bf16 %v681_v2, %v679_v1  ;;  %v761_v7 = vld [vmem:[%s1422_s5 + $0x8] sm:$0xff]  ;;  %v762_v8 = vld [vmem:[%s1422_s5 + $0x10] sm:$0xff]  ;;  %v847_v2 = vld [vmem:[%s1423_s6] sm:$0x1f] }
 0x112   : > { %v451_v12 = vadd.s32 536870912, %v450_v11 }
 0x114   : > { %v452_v13 = vshrl.u32 %v451_v12, 30  ;;  %v763_v12 = vld [vmem:[%s1422_s5 + $0x18] sm:$0xff] }
 0x116   : > { %v453_v14 = vshll.u32 %v452_v13, 30  ;;  %v476_v35 = vsub.s32 4, %v452_v13 }
 0x118   : > { %v454_v15 = vsub.s32 %v450_v11, %v453_v14  ;;  %v477_v38 = vsel %vm392_vm9, %v476_v35, %v452_v13  ;;  %v1113_v11 = vpack.c.bf16 %v761_v7, %v760_v5  ;;  %v1116_v13 = vpack.c.bf16 %v763_v12, %v762_v8  ;;  %v764_v14 = vld [vmem:[%s1422_s5 + $0x20] sm:$0xff] }
 0x119   : > { %v479_v40 = vsel %vm391_vm10, 0, %v477_v38 }
 0x11a   : > { %v456_v16 = vsub.s32 0, %v454_v15  ;;  %v586_v41 = vadd.s32 3, %v479_v40  ;;  %v483_v42 = vand.u32 3, %v479_v40  ;;  %1114 = vmatpush3.bf16.msra.mxu0 %v1113_v11 }
 0x11b   : > { %1115 = vmatprep.subr.bf16.mxu0 %v1190_v3 }
 0x11c   : > { %v1010_v18 = vmin.u32 %v456_v16, %v454_v15  ;;  %v587_v43 = vand.u32 3, %v586_v41  ;;  %vm488_vm11 = vcmp.eq.s32.totalorder %v483_v42, 2  ;;  %vm485_vm13 = vcmp.eq.s32.totalorder %v483_v42, 0 }
 0x11d   : > { %vm484_vm15 = vcmp.lt.s32.totalorder %v483_v42, 2 }
 0x11e   : > { %v458_v19 = vclz %v1010_v18  ;;  %vm592_vm12 = vcmp.eq.s32.totalorder %v587_v43, 2  ;;  %vm589_vm14 = vcmp.eq.s32.totalorder %v587_v43, 0  ;;  %vm588_vm2 = vcmp.lt.s32.totalorder %v587_v43, 2  ;;  %1117 = vmatpush3.bf16.msra.mxu0 %v1116_v13  ;;  %v766_v18 = vld [vmem:[%s1422_s5 + $0x30] sm:$0xff] }
 0x11f   : > { %1118 = vmatprep.subr.bf16.mxu0 %v1190_v3 }
 0x120   : > { %v1011_v20 = vadd.s32 4294967294, %v458_v19  ;;  %v767_v19 = vld [vmem:[%s1422_s5 + $0x38] sm:$0xff] }
 0x122   : > { %vm1012_vm8 = vcmp.lt.s32.totalorder %v1011_v20, 0 }
 0x123   : > { %v461_v21 = vsel %vm1012_vm8, 0, %v1011_v20  ;;  %v1122_v20 = vpack.c.bf16 %v767_v19, %v766_v18 }
 0x124   : > { %v462_v24 = vsub.s32 32, %v461_v21  ;;  %v466_v25 = vsub.s32 4294967266, %v461_v21  ;;  %v463_v26 = vshll.u32 %v454_v15, %v461_v21  ;;  %v765_v15 = vld [vmem:[%s1422_s5 + $0x28] sm:$0xff]  ;;  %v768_v21 = vld [vmem:[%s1422_s5 + $0x40] sm:$0xff] }
 0x125   : > { %v1119_v16 = vpack.c.bf16 %v765_v15, %v764_v14  ;;  %v1018_v14 = vld [vmem:[%s1424_s7] ss:$0 sm:$0xff] }
 0x126   : > { %v464_v27 = vshrl.u32 %v446_v23, %v462_v24  ;;  %v467_v28 = vadd.s32 127, %v466_v25  ;;  %v769_v23 = vld [vmem:[%s1422_s5 + $0x48] sm:$0xff]  ;;  %v770_v25 = vld [vmem:[%s1422_s5 + $0x50] sm:$0xff] }
 0x127   : > { %1120 = vmatpush3.bf16.msra.mxu0 %v1119_v16  ;;  %v1125_v24 = vpack.c.bf16 %v769_v23, %v768_v21 }
 0x128   : > { %v465_v29 = vor.u32 %v464_v27, %v463_v26  ;;  %v468_v30 = vshll.u32 %v467_v28, 23  ;;  %1121 = vmatprep.subr.bf16.mxu0 %v1190_v3  ;;  %v771_v26 = vld [vmem:[%s1422_s5 + $0x58] sm:$0xff]  ;;  %v772_v28 = vld [vmem:[%s1422_s5 + $0x60] sm:$0xff] }
 0x129   : > { %v1128_v27 = vpack.c.bf16 %v771_v26, %v770_v25 }
 0x12a   : > { %v469_v31 = vor.u32 4788187, %v468_v30  ;;  %v472_v33 = vcvt.s32.f32 %v465_v29  ;;  %v773_v29 = vld [vmem:[%s1422_s5 + $0x68] sm:$0xff] }
 0x12b   : > { %1123 = vmatpush3.bf16.msra.mxu0 %v1122_v20  ;;  %v1131_v30 = vpack.c.bf16 %v773_v29, %v772_v28 }
 0x12c   : > { %v470_v32 = vand.u32 2147483647, %v469_v31  ;;  %1124 = vmatprep.subr.bf16.mxu0 %v1190_v3  ;;  %v604_v31 = vlaneseq }
 0x12e   : > { %v473_v34 = vmul.f32 %v472_v33, %v470_v32 }
 0x12f   : > { %1126 = vmatpush3.bf16.msra.mxu0 %v1125_v24 }
 0x130   : > { %v474_v36 = vxor.u32 2147483648, %v473_v34  ;;  %1127 = vmatprep.subr.bf16.mxu0 %v1190_v3 }
 0x132   : > { %v475_v37 = vsel %vm392_vm9, %v474_v36, %v473_v34  ;;  %v605_v34 = vshrl.u32 %v604_v31, 7 }
 0x133   : > { %v478_v39 = vsel %vm391_vm10, %v1291_v17, %v475_v37  ;;  %v1203_v17 = vmov 4   ;;  %1129 = vmatpush3.bf16.msra.mxu0 %v1128_v27 }
 0x134   : > { %1174 = vcosq.f32 %v478_v39  ;;  %1130 = vmatprep.subr.bf16.mxu0 %v1190_v3  ;;  %v621_v37 = vsub.s32 1, %v605_v34  ;;  %v606_v38 = vsub.s32 0, %v605_v34  ;;  %v636_v40 = vsub.s32 2, %v605_v34 }
 0x135   : > { %1176 = vsinq.f32 %v478_v39  ;;  %v598_v39 = vld [vmem:[%s1420_s3] sm:$0x1f] }
 0x136   : > { %v622_v41 = vrot.slane %v598_v39, %v621_v37 }
 0x137   : > { %1132 = vmatpush3.bf16.msra.mxu0 %v1131_v30 }
 0x138   : > { %1133 = vmatprep.subr.bf16.mxu0 %v1190_v3  ;;  %v651_v3 = vsub.s32 3, %v605_v34 }
 0x13e   : > { %v1175_v44 = vpop.eup %1174 }
 0x13f   : > { %v1177_v45 = vpop.eup %1176  ;;  %v489_v46 = vxor.u32 2147483648, %v1175_v44 }
 0x140   : > { %v486_v47 = vxor.u32 2147483648, %v1177_v45 }
 0x141   : > { %v490_v48 = vsel %vm488_vm11, %v489_v46, %v1177_v45  ;;  %v594_v22 = vsel %vm592_vm12, %v489_v46, %v1177_v45  ;;  %v637_v45 = vrot.slane %v598_v39, %v636_v40 }
 0x142   : > { %v487_v49 = vsel %vm485_vm13, %v1175_v44, %v486_v47  ;;  %v591_v50 = vsel %vm589_vm14, %v1175_v44, %v486_v47  ;;  %v607_v44 = vrot.slane %v598_v39, %v606_v38 }
 0x143   : > { %v491_v51 = vsel %vm484_vm15, %v487_v49, %v490_v48  ;;  %v595_v52 = vsel %vm588_vm2, %v591_v50, %v594_v22  ;;  %v666_v49 = vsub.s32 4, %v605_v34 }
 0x144   : > { %v492_v53 = vsel %vm482_vm3, nan, %v491_v51  ;;  %v596_v54 = vsel %vm482_vm3, nan, %v595_v52  ;;  %v652_v51 = vrot.slane %v598_v39, %v651_v3 }
 0x145   : > { %640 = vperm.xlu0 %1164, %v492_v53   ;;  %v597_v55 = vsub.f32 %v596_v54, %v492_v53  ;;  %611 = vperm.xlu1 %1162, %v492_v53   ;;  %v667_v54 = vrot.slane %v598_v39, %v666_v49 }
 0x149   : > { %1166 = vset.pattern.permute.xlu0 %v1194_v10  ;;  %1163 = vset.pattern.permute.xlu1 %v1201_v56  ;;  %v676_v10 = vld [vmem:[%s1421_s4 + $0x8] sm:$0xff] }
 0x14a   : > { %625 = vperm.xlu1 %1163, %v492_v53   ;;  %601 = vperm.xlu0 %1166, %v597_v55   ;;  %v1104_v59 = vpack.c.bf16 %v678_v58, %v676_v10 }
 0x14c   : > { %1105 = vmatprep.subr.bf16.mxu1 %v1104_v59 }
 0x14e   : > { %1165 = vset.pattern.permute.xlu1 %v1202_v57  ;;  %1167 = vset.pattern.permute.xlu0 %v1201_v56 }
 0x14f   : > { %655 = vperm.xlu1 %1165, %v492_v53   ;;  %616 = vperm.xlu0 %1167, %v597_v55  }
 0x153   : > { %1168 = vset.pattern.permute.xlu1 %v1193_v9  ;;  %1170 = vset.pattern.permute.xlu0 %v1203_v17  ;;  %v677_v9 = vld [vmem:[%s1421_s4 + $0x10] sm:$0xff] }
 0x154   : > { %631 = vperm.xlu1 %1168, %v597_v55   ;;  %661 = vperm.xlu0 %1170, %v597_v55   ;;  %v1106_v61 = vpack.c.bf16 %v677_v9, %v675_v60 }
 0x156   : > { %1107 = vmatpush1.bf16.msra.mxu1 %v1106_v61 }
 0x157   : > { %1109 = vmatprep.subr.bf16.mxu1 %v1108_v0  ;;  %v775_v0 = vld [vmem:[%s1422_s5 + $0x78] sm:$0xff] }
 0x158   : > { %1169 = vset.pattern.permute.xlu1 %v1202_v57  ;;  %v1134_v1 = vpack.c.bf16 %v775_v0, %v774_v63 }
 0x159   : > { %646 = vperm.xlu1 %1169, %v597_v55  }
 0x15a   : > { %1111 = vmatpush1.bf16.msra.mxu1 %v1110_v4  ;;  %1135 = vmatpush3.bf16.msra.mxu0 %v1134_v1 }
 0x15b   : > { %1093 = vmatprep.subr.mxu1 %v1192_v6 }
 0x15d   : > { %1171 = vset.pattern.permute.xlu1 %v1203_v17 }
 0x15e   : > { %670 = vperm.xlu1 %1171, %v492_v53  }
 0x1c4   : > { %v641_v32 = vpop.permute.xlu0 %640  ;;  %v612_v33 = vpop.permute.xlu1 %611 }
 0x1c9   : > { %v626_v35 = vpop.permute.xlu1 %625  ;;  %v602_v36 = vpop.permute.xlu0 %601 }
 0x1ca   : > { %v608_v47 = vmul.f32 %v607_v44, %v602_v36 }
 0x1cc   : > { %v614_v52 = vadd.f32 %v612_v33, %v608_v47 }
 0x1ce   : > { %v656_v42 = vpop.permute.xlu1 %655  ;;  %v617_v43 = vpop.permute.xlu0 %616 }
 0x1cf   : > { %v623_v46 = vmul.f32 %v622_v41, %v617_v43 }
 0x1d1   : > { %v628_v50 = vadd.f32 %v626_v35, %v623_v46 }
 0x1d3   : > { %v632_v48 = vpop.permute.xlu1 %631  ;;  %v629_v56 = vmul.f32 %v628_v50, %v614_v52  ;;  %v662_v57 = vpop.permute.xlu0 %661 }
 0x1d4   : > { %v638_v22 = vmul.f32 %v637_v45, %v632_v48  ;;  %v668_v59 = vmul.f32 %v667_v54, %v662_v57 }
 0x1d6   : > { %v643_v53 = vadd.f32 %v641_v32, %v638_v22 }
 0x1d8   : > { %v647_v55 = vpop.permute.xlu1 %646  ;;  %v644_v10 = vmul.f32 %v643_v53, %v629_v56 }
 0x1d9   : > { %v653_v17 = vmul.f32 %v652_v51, %v647_v55 }
 0x1db   : > { %v658_v58 = vadd.f32 %v656_v42, %v653_v17 }
 0x1dd   : > { %v671_v60 = vpop.permute.xlu1 %670  ;;  %v659_v9 = vmul.f32 %v658_v58, %v644_v10 }
 0x1de   : > { %v673_v61 = vadd.f32 %v671_v60, %v668_v59 }
 0x1e0   : > { %v674_v62 = vmul.f32 %v673_v61, %v659_v9 }
 0x1e2   : > { %1017 = vmatmul.mubr.msk.f32.vlgmr.msra.gmra.mrb[2].mxu1 %vm313_vm1, %v674_v62  ;;  %vm933_vm1 = vcmask 15360  }
 0x1e3   : > { %1095 = vmatprep.mubr.msk.f32.mxu1 %vm1191_vm0, %v1192_v6  ;;  %1094 = vmatpush3.msk.msra.mxu1 %vm859_vm4, %v847_v2  ;;  %vm855_vm0 = vcmask 39936  }
 0x2b5   : > { %v752_v4 = vpop.f32.mrb[2].mxu1 }
 0x2b6   : > { %v757_v5 = vmul.f32 %v752_v4, %v752_v4  ;;  %v754_v7 = vpop.f32.mrb[3].mxu1 }
 0x2b7   : > { %v758_v6 = vmul.f32 %v754_v7, %v754_v7 }
 0x2b9   : > { %v759_v8 = vadd.f32 %v758_v6, %v757_v5 }
 0x2bb   : > { %1091 = vmatmul.mubr.f32.vlgmr.msra.gmra.mrb[0].mxu0 %v759_v8 }
 0x38e   : > { %v842_v11 = vpop.f32.mrb[0].mxu0 }
 0x38f   : > { %v846_v12 = vmax.f32 %v842_v11, 0.0  ;;  %v1092_v13 = vpop.f32.mrb[1].mxu0 }
 0x391   : > { %1096 = vmatmul.mubr.msk.f32.vlgmr.msra.gmra.mrb[4].mxu1 %vm855_vm0, %v846_v12 }
 0x464   : > { %v929_v15 = vpop.f32.mrb[4].mxu1 }
 0x465   : > { %v930_v16 = vadd.f32 %v1018_v14, %v929_v15  ;;  %v1097_v18 = vpop.f32.mrb[5].mxu1 }
 0x467   : > { %v934_v19 = vsel %vm933_vm1, %v930_v16, -inf }
 0x468   : > { %935 = vmax.xlane.f32.xlu1 %v934_v19 }
 0x4f5   : > { %v936_v20 = vpop.xlane.xlu1 %935 }
 0x4f6   : > { %v937_v21 = vsub.f32 %v930_v16, %v936_v20 }
 0x4f8   : > { %v938_v23 = vmul.f32 1.442695, %v937_v21 }
 0x4fa   : > { %1178 = vpow2.f32 %v938_v23 }
 0x504   : > { %v1179_v24 = vpop.eup %1178 }
 0x505   : > { %v940_v25 = vsel %vm933_vm1, %v1179_v24, 0.0 }
 0x506   : > { %941 = vadd.xlane.f32.xlu0 %v940_v25 }
 0x593   : > { %v942_v26 = vpop.xlane.xlu0 %941 }
 0x594   : > { %1180 = vlog2.f32 %v942_v26 }
 0x59e   : > { %v1181_v27 = vpop.eup %1180 }
 0x59f   : > { %v944_v28 = vmul.f32 0.6931472, %v1181_v27 }
 0x5a1   : > { %v945_v29 = vsub.f32 %v937_v21, %v944_v28 }
 0x5a3   : > { %946 = vst.msk [vmem:[%s300_s20] sm:$0xff] %vm933_vm1, %v945_v29 }
 0x5a4 PF: > { %s18_s27 = sadd.s32 1, %s1188_s27  }
 0x5a5   : > { %p15_p4 = scmp.ge.s32.totalorder %s18_s27, 4  }
 0x5a7   :  { %17 = sbr.rel (!%p15_p4) target bundleno = 1 (0x1), region = 82 }

</bundles_post_ra>
